<compile_context>
chip_gen: v6e
topology: v6e:2x2x1
jax: 0.10.0
libtpu: 0.0.40
codegen_flags: <defaults>
</compile_context>

<pallas_src>
import math

import jax
import jax.numpy as jnp
from jax.experimental import pallas as pl
from jax.experimental.pallas import tpu as pltpu

LANE = 128          # pad hidden feature widths to a full lane tile
TILE_B_MAX = 8192   # max rows per grid step (fits every generation's VMEM)
SPLIT_MIN = 2048    # padded batch size above which we force >=2 grid tiles


def _round_up(x, m):
    return ((x + m - 1) // m) * m


def _batch_tiling(B):
    """Pick (tile_b, grid_b) so per-step overhead is amortized, padding waste
    is at most one 16-row group per tile, and big batches give v7x's second
    TensorCore a tile of its own."""
    b16 = _round_up(max(B, 1), 16)
    grid_b = pl.cdiv(b16, TILE_B_MAX)
    if grid_b == 1 and b16 >= SPLIT_MIN:
        grid_b = 2
    tile_b = _round_up(pl.cdiv(b16, grid_b), 16)
    return tile_b, grid_b


def mlp_kernel(x_ref, w1_ref, b1_ref, w2_ref, b2_ref, w3_ref, b3_ref, out_ref):
    """Fused MLP forward for one batch tile.

    x_ref:   (tile_b, num_inputs)  bf16
    w1_ref:  (num_inputs, 128)     bf16   (VMEM-resident across the grid)
    w2_ref:  (128, 128)            bf16
    w3_ref:  (128, 128)            bf16   (cols >= num_outputs are zero)
    b1/b2:   (1, 128)              f32
    b3_ref:  (1, num_outputs)      f32
    out_ref: (tile_b, num_outputs) f32    (dense, no padded columns)
    """
    n_out = out_ref.shape[-1]
    x = x_ref[...]

    # Hidden layer 1: Linear (bf16 MXU, f32 accumulate) + ReLU
    h = jnp.dot(x, w1_ref[...], preferred_element_type=jnp.float32) + b1_ref[...]
    h = jnp.maximum(h, 0.0).astype(jnp.bfloat16)

    # Hidden layer 2: Linear + ReLU
    h = jnp.dot(h, w2_ref[...], preferred_element_type=jnp.float32) + b2_ref[...]
    h = jnp.maximum(h, 0.0).astype(jnp.bfloat16)

    # Output layer: Linear + Sigmoid.  sigmoid(o) = 0.5*(tanh(o/2)+1):
    # stable for any logit and uses the EUP tanh slot.
    o = jnp.dot(h, w3_ref[...], preferred_element_type=jnp.float32)
    o = o[:, :n_out] + b3_ref[...]
    out_ref[...] = 0.5 * jnp.tanh(0.5 * o) + 0.5


def pad_params(params):
    """Zero-pad hidden/output feature widths to a full 128-lane tile and cast
    the weights to bf16 (biases stay f32).  Padded rows/cols contribute exactly
    0 to the real outputs, so forward semantics are unchanged."""
    def pad_to(a, rows, cols):
        r, c = a.shape
        return jnp.pad(a, ((0, rows - r), (0, cols - c)))

    return {
        "w1": pad_to(params["w1"], params["w1"].shape[0], LANE).astype(jnp.bfloat16),
        "b1": pad_to(params["b1"], 1, LANE).astype(jnp.float32),
        "w2": pad_to(params["w2"], LANE, LANE).astype(jnp.bfloat16),
        "b2": pad_to(params["b2"], 1, LANE).astype(jnp.float32),
        "w3": pad_to(params["w3"], LANE, LANE).astype(jnp.bfloat16),
        "b3": params["b3"].astype(jnp.float32),   # (1, num_outputs), un-padded
    }


def neural_network_forward(x, padded_params, num_outputs):
    """x: (B, num_inputs) float.  padded_params: output of pad_params()."""
    w1, b1 = padded_params["w1"], padded_params["b1"]
    w2, b2 = padded_params["w2"], padded_params["b2"]
    w3, b3 = padded_params["w3"], padded_params["b3"]

    B, num_inputs = x.shape
    tile_b, grid_b = _batch_tiling(B)
    B_pad = tile_b * grid_b

    # In production, feed bf16 activations directly to skip this cast pass;
    # here the cast fuses with the (small) batch pad.
    x_in = x.astype(jnp.bfloat16)
    if B_pad != B:
        x_in = jnp.pad(x_in, ((0, B_pad - B), (0, 0)))

    def resident(arr):
        return pl.BlockSpec(arr.shape, lambda i: (0, 0))

    out = pl.pallas_call(
        mlp_kernel,
        out_shape=jax.ShapeDtypeStruct((B_pad, num_outputs), jnp.float32),
        grid_spec=pltpu.PrefetchScalarGridSpec(
            num_scalar_prefetch=0,
            grid=(grid_b,),
            in_specs=[
                pl.BlockSpec((tile_b, num_inputs), lambda i: (i, 0)),
                resident(w1), resident(b1),
                resident(w2), resident(b2),
                resident(w3), resident(b3),
            ],
            out_specs=pl.BlockSpec((tile_b, num_outputs), lambda i: (i, 0)),
        ),
        compiler_params=pltpu.CompilerParams(
            dimension_semantics=("parallel",),
        ),
    )(x_in, w1, b1, w2, b2, w3, b3)

    if B_pad != B:
        out = out[:B]
    return out


def init_params(key, num_inputs, num_hidden, neurons, num_outputs):
    """Deterministic init matching torch.nn.Linear's default
    U(-1/sqrt(fan_in), 1/sqrt(fan_in)).  Weights stored transposed as
    (in_features, out_features); biases as (1, out_features)."""
    assert num_hidden == 2, "script is specialized to 2 hidden layers"
    dims = [(num_inputs, neurons), (neurons, neurons), (neurons, num_outputs)]
    params = {}
    keys = jax.random.split(key, 2 * len(dims))
    for i, (fan_in, fan_out) in enumerate(dims):
        bound = 1.0 / math.sqrt(fan_in)
        params[f"w{i + 1}"] = jax.random.uniform(
            keys[2 * i], (fan_in, fan_out),
            minval=-bound, maxval=bound, dtype=jnp.float32)
        params[f"b{i + 1}"] = jax.random.uniform(
            keys[2 * i + 1], (1, fan_out),
            minval=-bound, maxval=bound, dtype=jnp.float32)
    return params


if __name__ == "__main__":
    NUM_INPUTS = 32
    NUM_HIDDEN_LAYERS = 2
    NEURONS = 32
    NUM_OUTPUTS = 8
    BATCH = 2  # NOTE: a batch this small is pure launch overhead; the kernel is
               # designed for large batches, where big batch tiles + resident
               # weights + dense bf16 I/O pay off.

    key = jax.random.PRNGKey(0)
    k_x, k_p = jax.random.split(key)

    x = jax.random.normal(k_x, (BATCH, NUM_INPUTS), dtype=jnp.float32)
    params = init_params(k_p, NUM_INPUTS, NUM_HIDDEN_LAYERS, NEURONS, NUM_OUTPUTS)
    padded = pad_params(params)

    out = neural_network_forward(x, padded, NUM_OUTPUTS)
    out = jax.block_until_ready(out)

    # Pure-JAX f32 reference against the un-padded parameters.
    h = jnp.maximum(x @ params["w1"] + params["b1"], 0.0)
    h = jnp.maximum(h @ params["w2"] + params["b2"], 0.0)
    ref = jax.nn.sigmoid(h @ params["w3"] + params["b3"])

    assert out.shape == (BATCH, NUM_OUTPUTS)
    # bf16 weights/activations with f32 accumulation: expected abs error ~1e-3
    # on sigmoid outputs; 2e-2 tolerance is comfortable.
    assert jnp.allclose(out, ref, atol=2e-2, rtol=2e-2), (
        f"max abs err {jnp.max(jnp.abs(out - ref))}")

    print("KERNEL_OK")
</pallas_src>

<mosaic_0001>
module attributes {stable_mosaic.version = 11 : i64} {
  func.func @mlp_kernel(%arg0: i32, %arg1: memref<16x32xbf16, #tpu.memory_space<vmem>>, %arg2: memref<32x128xbf16, #tpu.memory_space<vmem>>, %arg3: memref<1x128xf32, #tpu.memory_space<vmem>>, %arg4: memref<128x128xbf16, #tpu.memory_space<vmem>>, %arg5: memref<1x128xf32, #tpu.memory_space<vmem>>, %arg6: memref<128x128xbf16, #tpu.memory_space<vmem>>, %arg7: memref<1x8xf32, #tpu.memory_space<vmem>>, %arg8: memref<16x8xf32, #tpu.memory_space<vmem>>) attributes {dimension_semantics = [#tpu.dimension_semantics<parallel>], iteration_bounds = array<i64: 1>, scalar_prefetch = 0 : i64, scratch_operands = 0 : i64, tpu.core_type = #tpu.core_type<tc>, window_params = [{transform_indices = @transform_0, window_bounds = array<i64: 16, 32>}, {pipeline_mode = #tpu.pipeline_mode<synchronous>, transform_indices = @transform_1, window_bounds = array<i64: 32, 128>}, {pipeline_mode = #tpu.pipeline_mode<synchronous>, transform_indices = @transform_2, window_bounds = array<i64: 1, 128>}, {pipeline_mode = #tpu.pipeline_mode<synchronous>, transform_indices = @transform_3, window_bounds = array<i64: 128, 128>}, {pipeline_mode = #tpu.pipeline_mode<synchronous>, transform_indices = @transform_4, window_bounds = array<i64: 1, 128>}, {pipeline_mode = #tpu.pipeline_mode<synchronous>, transform_indices = @transform_5, window_bounds = array<i64: 128, 128>}, {pipeline_mode = #tpu.pipeline_mode<synchronous>, transform_indices = @transform_6, window_bounds = array<i64: 1, 8>}, {transform_indices = @transform_7, window_bounds = array<i64: 16, 8>}]} {
    %c0 = arith.constant 0 : index
    %c0_0 = arith.constant 0 : index
    %0 = vector.load %arg1[%c0, %c0_0] : memref<16x32xbf16, #tpu.memory_space<vmem>>, vector<16x32xbf16>
    %c0_1 = arith.constant 0 : index
    %c0_2 = arith.constant 0 : index
    %1 = vector.load %arg2[%c0_1, %c0_2] : memref<32x128xbf16, #tpu.memory_space<vmem>>, vector<32x128xbf16>
    %cst = arith.constant dense<0.000000e+00> : vector<16x128xf32>
    %2 = tpu.matmul %0, %1, %cst {dimension_numbers = #tpu.dot_dimension_numbers<[1], [0], [0], [1], [0, 0, 1, 1], [], []>} : vector<16x32xbf16>, vector<32x128xbf16>, vector<16x128xf32> -> vector<16x128xf32>
    %c0_3 = arith.constant 0 : index
    %c0_4 = arith.constant 0 : index
    %3 = vector.load %arg3[%c0_3, %c0_4] : memref<1x128xf32, #tpu.memory_space<vmem>>, vector<1x128xf32>
    %4 = vector.broadcast %3 : vector<1x128xf32> to vector<16x128xf32>
    %5 = arith.addf %2, %4 : vector<16x128xf32>
    %cst_5 = arith.constant 0.000000e+00 : f32
    %6 = vector.broadcast %cst_5 : f32 to vector<16x128xf32>
    %7 = arith.maximumf %5, %6 : vector<16x128xf32>
    %8 = arith.truncf %7 : vector<16x128xf32> to vector<16x128xbf16>
    %c0_6 = arith.constant 0 : index
    %c0_7 = arith.constant 0 : index
    %9 = vector.load %arg4[%c0_6, %c0_7] : memref<128x128xbf16, #tpu.memory_space<vmem>>, vector<128x128xbf16>
    %cst_8 = arith.constant dense<0.000000e+00> : vector<16x128xf32>
    %10 = tpu.matmul %8, %9, %cst_8 {dimension_numbers = #tpu.dot_dimension_numbers<[1], [0], [0], [1], [0, 0, 1, 1], [], []>} : vector<16x128xbf16>, vector<128x128xbf16>, vector<16x128xf32> -> vector<16x128xf32>
    %c0_9 = arith.constant 0 : index
    %c0_10 = arith.constant 0 : index
    %11 = vector.load %arg5[%c0_9, %c0_10] : memref<1x128xf32, #tpu.memory_space<vmem>>, vector<1x128xf32>
    %12 = vector.broadcast %11 : vector<1x128xf32> to vector<16x128xf32>
    %13 = arith.addf %10, %12 : vector<16x128xf32>
    %cst_11 = arith.constant 0.000000e+00 : f32
    %14 = vector.broadcast %cst_11 : f32 to vector<16x128xf32>
    %15 = arith.maximumf %13, %14 : vector<16x128xf32>
    %16 = arith.truncf %15 : vector<16x128xf32> to vector<16x128xbf16>
    %c0_12 = arith.constant 0 : index
    %c0_13 = arith.constant 0 : index
    %17 = vector.load %arg6[%c0_12, %c0_13] : memref<128x128xbf16, #tpu.memory_space<vmem>>, vector<128x128xbf16>
    %cst_14 = arith.constant dense<0.000000e+00> : vector<16x128xf32>
    %18 = tpu.matmul %16, %17, %cst_14 {dimension_numbers = #tpu.dot_dimension_numbers<[1], [0], [0], [1], [0, 0, 1, 1], [], []>} : vector<16x128xbf16>, vector<128x128xbf16>, vector<16x128xf32> -> vector<16x128xf32>
    %19 = vector.extract_strided_slice %18 {offsets = [0, 0], sizes = [16, 8], strides = [1, 1]} : vector<16x128xf32> to vector<16x8xf32>
    %c0_15 = arith.constant 0 : index
    %c0_16 = arith.constant 0 : index
    %20 = vector.load %arg7[%c0_15, %c0_16] : memref<1x8xf32, #tpu.memory_space<vmem>>, vector<1x8xf32>
    %21 = vector.broadcast %20 : vector<1x8xf32> to vector<16x8xf32>
    %22 = arith.addf %19, %21 : vector<16x8xf32>
    %cst_17 = arith.constant 5.000000e-01 : f32
    %23 = vector.broadcast %cst_17 : f32 to vector<16x8xf32>
    %24 = arith.mulf %23, %22 : vector<16x8xf32>
    %25 = math.tanh %24 : vector<16x8xf32>
    %cst_18 = arith.constant 5.000000e-01 : f32
    %26 = vector.broadcast %cst_18 : f32 to vector<16x8xf32>
    %27 = arith.mulf %26, %25 : vector<16x8xf32>
    %cst_19 = arith.constant 5.000000e-01 : f32
    %28 = vector.broadcast %cst_19 : f32 to vector<16x8xf32>
    %29 = arith.addf %27, %28 : vector<16x8xf32>
    %c0_20 = arith.constant 0 : index
    %c0_21 = arith.constant 0 : index
    %30 = vector.load %arg8[%c0_20, %c0_21] : memref<16x8xf32, #tpu.memory_space<vmem>>, vector<16x8xf32>
    tpu.vector_store %arg8[%c0_20, %c0_21], %29 {strides = array<i32>} : memref<16x8xf32, #tpu.memory_space<vmem>>, vector<16x8xf32>,
    return
  }
  func.func @transform_0(%arg0: i32) -> (i32, i32) {
    %c0_i32 = arith.constant 0 : i32
    %c0_i32_0 = arith.constant 0 : i32
    return %arg0, %c0_i32 : i32, i32
  }
  func.func @transform_1(%arg0: i32) -> (i32, i32) {
    %c0_i32 = arith.constant 0 : i32
    %c0_i32_0 = arith.constant 0 : i32
    %c0_i32_1 = arith.constant 0 : i32
    return %c0_i32, %c0_i32_0 : i32, i32
  }
  func.func @transform_2(%arg0: i32) -> (i32, i32) {
    %c0_i32 = arith.constant 0 : i32
    %c0_i32_0 = arith.constant 0 : i32
    %c0_i32_1 = arith.constant 0 : i32
    return %c0_i32, %c0_i32_0 : i32, i32
  }
  func.func @transform_3(%arg0: i32) -> (i32, i32) {
    %c0_i32 = arith.constant 0 : i32
    %c0_i32_0 = arith.constant 0 : i32
    %c0_i32_1 = arith.constant 0 : i32
    return %c0_i32, %c0_i32_0 : i32, i32
  }
  func.func @transform_4(%arg0: i32) -> (i32, i32) {
    %c0_i32 = arith.constant 0 : i32
    %c0_i32_0 = arith.constant 0 : i32
    %c0_i32_1 = arith.constant 0 : i32
    return %c0_i32, %c0_i32_0 : i32, i32
  }
  func.func @transform_5(%arg0: i32) -> (i32, i32) {
    %c0_i32 = arith.constant 0 : i32
    %c0_i32_0 = arith.constant 0 : i32
    %c0_i32_1 = arith.constant 0 : i32
    return %c0_i32, %c0_i32_0 : i32, i32
  }
  func.func @transform_6(%arg0: i32) -> (i32, i32) {
    %c0_i32 = arith.constant 0 : i32
    %c0_i32_0 = arith.constant 0 : i32
    %c0_i32_1 = arith.constant 0 : i32
    return %c0_i32, %c0_i32_0 : i32, i32
  }
  func.func @transform_7(%arg0: i32) -> (i32, i32) {
    %c0_i32 = arith.constant 0 : i32
    %c0_i32_0 = arith.constant 0 : i32
    return %arg0, %c0_i32 : i32, i32
  }
}

</mosaic_0001>

<bundles_post_ra>
// kernel: tpu_custom_call.1
= control target key start
LH: loop header
LB: loop body
LE: loop exit
PB: predicated region body
PF: predicated region fallthrough
CT: control target
= control target key end

     0   :  { %12 = vsyncpa [#allocation3], 0  ;;  %s727_s0 = inlined_call_operand.hbm [shape: bf16[16,32], index: 0, kind: input, shape index: {}]   ;;  %s728_s1 = inlined_call_operand.hbm [shape: bf16[32,128], index: 1, kind: input, shape index: {}]   ;;  %s729_s2 = inlined_call_operand.vmem [shape: f32[1,128], index: 2, kind: input, shape index: {}]   ;;  %s730_s3 = inlined_call_operand.hbm [shape: bf16[128,128], index: 3, kind: input, shape index: {}]   ;;  %s731_s4 = inlined_call_operand.vmem [shape: f32[1,128], index: 4, kind: input, shape index: {}]   ;;  %s732_s5 = inlined_call_operand.hbm [shape: bf16[128,128], index: 5, kind: input, shape index: {}]   ;;  %s733_s6 = inlined_call_operand.vmem [shape: f32[1,8], index: 6, kind: input, shape index: {}]   ;;  %s734_s7 = inlined_call_operand.vmem [shape: f32[16,8], index: 7, kind: output, shape index: {}]  }
   0x1   :  { %13 = vsyncpa [#allocation5], 0 }
   0x2   :  { %14 = vsyncpa [#allocation8], 0  ;;  %s616_s24 = smov [#allocation4]   ;;  %s617_s26 = smov [#allocation2]  }
   0x3   :  { %s32_s25 = sshll.u32 %s616_s24, 4  ;;  %s20_s27 = sshll.u32 %s617_s26, 4  ;;  %s33_s25 = int_to_ptr.vmem [resolvable:$true] %s32_s25  ;;  %s21_s27 = int_to_ptr.vmem [resolvable:$true] %s20_s27 }
   0x4   :  { %s538_s28 = scalar_lea.vmem %s33_s25, 256  ;;  %p543_p1 = scmp.lt.s32.totalorder %s33_s25, %s33_s25 }
   0x5   :  { %p539_p0 = scmp.ne.s32.totalorder %s33_s25, %s538_s28  ;;  %p544_p2 = scmp.lt.s32.totalorder %s538_s28, %s538_s28 }
   0x7   :  { %p545_p3 = por %p544_p2, %p543_p1 }
   0x9   :  { %p546_p4 = pnand %p545_p3, %p539_p0 }
   0xb   :  { %549 = shalt.err (!%p546_p4)
}
   0xc   :  { %s618_s29 = smov 64   ;;  %s619_s30 = smov 4  }
   0xd   :  { %38 = dma.hbm_to_vmem [thread:$0]  %s728_s1, 256, %s33_s25, [#allocation5], %s618_s29, %s618_s29, %s619_s30  }
   0xe   :  { %s558_s10 = scalar_lea.vmem %s21_s27, 128  ;;  %p563_p6 = scmp.lt.s32.totalorder %s21_s27, %s21_s27 }
   0xf   :  { %p559_p5 = scmp.ne.s32.totalorder %s21_s27, %s558_s10  ;;  %p564_p7 = scmp.lt.s32.totalorder %s558_s10, %s558_s10 }
  0x11   :  { %p565_p8 = por %p564_p7, %p563_p6 }
  0x13   :  { %p566_p9 = pnand %p565_p8, %p559_p5 }
  0x15   :  { %569 = shalt.err (!%p566_p9)
}
  0x16   :  { %26 = dma.hbm_to_vmem [thread:$0]  %s727_s0, 128, %s21_s27, [#allocation3], %s618_s29, %s618_s29, %s619_s30  }
  0x17   :  { %s620_s13 = smov [#allocation6]   ;;  %s621_s15 = smov [#allocation7]  }
  0x18   :  { %s46_s14 = sshll.u32 %s620_s13, 4  ;;  %s60_s16 = sshll.u32 %s621_s15, 4  ;;  %s47_s14 = int_to_ptr.vmem [resolvable:$true] %s46_s14  ;;  %s61_s16 = int_to_ptr.vmem [resolvable:$true] %s60_s16 }
  0x19   :  { %s578_s1 = scalar_lea.vmem %s47_s14, 1024  ;;  %p583_p11 = scmp.lt.s32.totalorder %s47_s14, %s47_s14 }
  0x1a   :  { %p579_p10 = scmp.ne.s32.totalorder %s47_s14, %s578_s1  ;;  %p584_p12 = scmp.lt.s32.totalorder %s578_s1, %s578_s1 }
  0x1c   :  { %p585_p13 = por %p584_p12, %p583_p11 }
  0x1e   :  { %p586_p0 = pnand %p585_p13, %p579_p10 }
  0x20   :  { %589 = shalt.err (!%p586_p0)
}
  0x21   :  { %52 = dma.hbm_to_vmem [thread:$0]  %s730_s3, 1024, %s47_s14, [#allocation5], %s618_s29, %s618_s29, %s619_s30  }
  0x22   :  { %s598_s0 = scalar_lea.vmem %s61_s16, 1024  ;;  %p603_p2 = scmp.lt.s32.totalorder %s61_s16, %s61_s16 }
  0x23   :  { %p599_p1 = scmp.ne.s32.totalorder %s61_s16, %s598_s0  ;;  %p604_p3 = scmp.lt.s32.totalorder %s598_s0, %s598_s0 }
  0x25   :  { %p605_p4 = por %p604_p3, %p603_p2 }
  0x27   :  { %p606_p5 = pnand %p605_p4, %p599_p1 }
  0x29   :  { %609 = shalt.err (!%p606_p5)
}
  0x2a   :  { %66 = dma.hbm_to_vmem [thread:$0]  %s732_s5, 1024, %s61_s16, [#allocation8], %s618_s29, %s618_s29, %s619_s30  }
  0x2b   :  { %610 = dma.done.wait [#allocation3], 128  }
  0x2c   :  { %611 = vsyncadd [#allocation3], 4294967168 }
  0x2d   :  { %612 = dma.done.wait [#allocation5], 1280  }
  0x2e   :  { %613 = vsyncadd [#allocation5], 4294966016 }
  0x2f   :  { %614 = dma.done.wait [#allocation8], 1024  }
  0x30   :  { %615 = vsyncadd [#allocation8], 4294966272  ;;  %v622_v0 = vmov 0.0   ;;  %vm623_vm0 = vmmov 0   ;;  %v507_v1 = vld [vmem:[#allocation4 + $0x8] sm:$0xff]   ;;  %v508_v2 = vld [vmem:[#allocation4] sm:$0xff]  }
  0x31   :  { %451 = vmatprep.subr.bf16.mxu0 %v622_v0  ;;  %455 = vmatprep.mubr.msk.bf16.mxu0 %vm623_vm0, %v622_v0  ;;  %v510_v3 = vld [vmem:[#allocation6 + $0x38] sm:$0xff]   ;;  %v509_v4 = vld [vmem:[#allocation2] sm:$0xff]   ;;  %v511_v5 = vld [vmem:[#allocation6 + $0x30] sm:$0xff]   ;;  %vm112_vm1 = vcmask 261120   ;;  %vm397_vm2 = vcmask 64512  }
  0x32   :  { %459 = vmatprep.subr.bf16.mxu1 %v622_v0  ;;  %475 = vmatprep.mubr.msk.bf16.mxu1 %vm623_vm0, %v622_v0  ;;  %v512_v6 = vld [vmem:[#allocation6 + $0x28] sm:$0xff]   ;;  %v513_v7 = vld [vmem:[#allocation6 + $0x20] sm:$0xff]   ;;  %v514_v8 = vld [vmem:[#allocation6 + $0x18] sm:$0xff]  }
  0x33   :  { %452 = vmatpush3.bf16.msra.mxu0 %v507_v1  ;;  %460 = vmatpush3.bf16.msra.mxu1 %v510_v3  ;;  %v515_v9 = vld [vmem:[#allocation6 + $0x10] sm:$0xff]   ;;  %v516_v10 = vld [vmem:[#allocation6 + $0x8] sm:$0xff]   ;;  %v517_v11 = vld [vmem:[#allocation6] sm:$0xff]  }
  0x34   :  { %453 = vmatprep.subr.bf16.mxu0 %v622_v0  ;;  %461 = vmatprep.subr.bf16.mxu1 %v622_v0  ;;  %v518_v12 = vld [vmem:[#allocation7 + $0x38] sm:$0xff]   ;;  %v519_v13 = vld [vmem:[#allocation7 + $0x30] sm:$0xff]   ;;  %v520_v14 = vld [vmem:[#allocation7 + $0x28] sm:$0xff]  }
  0x35   :  { %v521_v15 = vld [vmem:[#allocation7 + $0x20] sm:$0xff]   ;;  %v522_v16 = vld [vmem:[#allocation7 + $0x18] sm:$0xff]   ;;  %v407_v17 = vld [vmem:[%s729_s2] ss:$0 sm:$0xff] }
  0x36   :  { %v523_v27 = vld [vmem:[#allocation7 + $0x10] sm:$0xff]   ;;  %v524_v28 = vld [vmem:[#allocation7 + $0x8] sm:$0xff]   ;;  %v525_v29 = vld [vmem:[#allocation7] sm:$0xff]  }
  0x37   :  { %454 = vmatpush3.bf16.msra.mxu0 %v508_v2  ;;  %462 = vmatpush3.bf16.msra.mxu1 %v511_v5  ;;  %v412_v30 = vld [vmem:[%s731_s4] ss:$0 sm:$0xff] }
  0x38   :  { %479 = vmatprep.subr.bf16.mxu0 %v622_v0  ;;  %463 = vmatprep.subr.bf16.mxu1 %v622_v0  ;;  %v429_v40 = vld [vmem:[%s733_s6] ss:$0 sm:$0xff] }
  0x3a   :  { %456 = vmatmul.mubr.msk.bf16.vlgmr.msra.gmra.mxu0 %vm112_vm1, %v509_v4 }
  0x3b   :  { %495 = vmatprep.mubr.msk.bf16.mxu0 %vm623_vm0, %v622_v0  ;;  %464 = vmatpush3.bf16.msra.mxu1 %v512_v6 }
  0x3c   :  { %465 = vmatprep.subr.bf16.mxu1 %v622_v0  ;;  %480 = vmatpush3.bf16.msra.mxu0 %v518_v12 }
  0x3d   :  { %481 = vmatprep.subr.bf16.mxu0 %v622_v0 }
  0x3f   :  { %466 = vmatpush3.bf16.msra.mxu1 %v513_v7 }
  0x40   :  { %467 = vmatprep.subr.bf16.mxu1 %v622_v0  ;;  %482 = vmatpush3.bf16.msra.mxu0 %v519_v13 }
  0x41   :  { %483 = vmatprep.subr.bf16.mxu0 %v622_v0 }
  0x43   :  { %468 = vmatpush3.bf16.msra.mxu1 %v514_v8 }
  0x44   :  { %469 = vmatprep.subr.bf16.mxu1 %v622_v0  ;;  %484 = vmatpush3.bf16.msra.mxu0 %v520_v14 }
  0x45   :  { %485 = vmatprep.subr.bf16.mxu0 %v622_v0 }
  0x47   :  { %470 = vmatpush3.bf16.msra.mxu1 %v515_v9 }
  0x48   :  { %471 = vmatprep.subr.bf16.mxu1 %v622_v0  ;;  %486 = vmatpush3.bf16.msra.mxu0 %v521_v15 }
  0x49   :  { %487 = vmatprep.subr.bf16.mxu0 %v622_v0 }
  0x4b   :  { %472 = vmatpush3.bf16.msra.mxu1 %v516_v10 }
  0x4c   :  { %473 = vmatprep.subr.bf16.mxu1 %v622_v0  ;;  %488 = vmatpush3.bf16.msra.mxu0 %v522_v16 }
  0x4d   :  { %489 = vmatprep.subr.bf16.mxu0 %v622_v0 }
  0x4f   :  { %474 = vmatpush3.bf16.msra.mxu1 %v517_v11 }
  0x50   :  { %490 = vmatpush3.bf16.msra.mxu0 %v523_v27 }
  0x51   :  { %491 = vmatprep.subr.bf16.mxu0 %v622_v0 }
  0x54   :  { %492 = vmatpush3.bf16.msra.mxu0 %v524_v28 }
  0x55   :  { %493 = vmatprep.subr.bf16.mxu0 %v622_v0 }
  0x58   :  { %494 = vmatpush3.bf16.msra.mxu0 %v525_v29 }
  0xfa   :  { %v150_v18 = vpop.f32.mrf.mxu0 }
  0xfb   :  { %v151_v20 = vadd.f32 %v407_v17, %v150_v18 }
  0xfc   :  { %v457_v19 = vpop.f32.mrf.mxu0 }
  0xfd   :  { %v157_v24 = vmax.f32 %v151_v20, 0.0 }
  0xfe   :  { %v153_v21 = vpop.f32.mrf.mxu0 }
  0xff   :  { %v154_v22 = vadd.f32 %v407_v17, %v153_v21 }
 0x100   :  { %v458_v23 = vpop.f32.mrf.mxu0 }
 0x101   :  { %v158_v25 = vmax.f32 %v154_v22, 0.0 }
 0x103   :  { %v159_v26 = vpack.c.bf16 %v158_v25, %v157_v24 }
 0x105   :  { %476 = vmatmul.mubr.bf16.vlgmr.msra.gmra.mxu1 %v159_v26 }
 0x1c5   :  { %v265_v31 = vpop.f32.mrf.mxu1 }
 0x1c6   :  { %v266_v33 = vadd.f32 %v412_v30, %v265_v31 }
 0x1c7   :  { %v477_v32 = vpop.f32.mrf.mxu1 }
 0x1c8   :  { %v272_v37 = vmax.f32 %v266_v33, 0.0 }
 0x1c9   :  { %v268_v34 = vpop.f32.mrf.mxu1 }
 0x1ca   :  { %v269_v35 = vadd.f32 %v412_v30, %v268_v34 }
 0x1cb   :  { %v478_v36 = vpop.f32.mrf.mxu1 }
 0x1cc   :  { %v273_v38 = vmax.f32 %v269_v35, 0.0 }
 0x1ce   :  { %v274_v39 = vpack.c.bf16 %v273_v38, %v272_v37 }
 0x1d0   :  { %496 = vmatmul.mubr.bf16.vlgmr.msra.gmra.mxu0 %v274_v39 }
 0x290   :  { %v373_v41 = vpop.f32.mrf.mxu0 }
 0x291   :  { %v387_v42 = vadd.f32 %v429_v40, %v373_v41 }
 0x292   :  { %v497_v43 = vpop.f32.mrf.mxu0 }
 0x293   :  { %v389_v44 = vmul.f32 0.5, %v387_v42 }
 0x294   :  { %v376_v45 = vpop.f32.mrf.mxu0 }
 0x295   :  { %526 = vtanh.f32 %v389_v44  ;;  %v388_v46 = vadd.f32 %v429_v40, %v376_v45 }
 0x296   :  { %v498_v47 = vpop.f32.mrf.mxu0 }
 0x297   :  { %v390_v48 = vmul.f32 0.5, %v388_v46 }
 0x299   :  { %528 = vtanh.f32 %v390_v48 }
 0x2a2   :  { %v527_v49 = vpop.eup %526 }
 0x2a3   :  { %v393_v50 = vmul.f32 0.5, %v527_v49 }
 0x2a5   :  { %v395_v51 = vadd.f32 0.5, %v393_v50 }
 0x2a6   :  { %v529_v52 = vpop.eup %528 }
 0x2a7   :  { %398 = vst.msk [vmem:[%s734_s7] sm:$0xff] %vm397_vm2, %v395_v51  ;;  %v394_v53 = vmul.f32 0.5, %v529_v52 }
 0x2a9   :  { %v396_v54 = vadd.f32 0.5, %v394_v53 }
 0x2ab   :  { %399 = vst.msk [vmem:[%s734_s7 + $0x8] sm:$0xff] %vm397_vm2, %v396_v54 }
 0x2ac   :  { %404 = vsyncpa [#allocation3], 1 }
 0x2ad   :  { %405 = vsyncpa [#allocation5], 1 }
 0x2ae   :  { %406 = vsyncpa [#allocation8], 1 }

</bundles_post_ra>
